<compile_context>
chip_gen: v7x
topology: tpu7x:2x2x1
jax: 0.10.0
libtpu: 0.0.40
codegen_flags: <defaults>
</compile_context>

<pallas_src>
import functools

import jax
import jax.numpy as jnp
from jax import lax
from jax.experimental import pallas as pl
from jax.experimental.pallas import tpu as pltpu


def _vmem_limit_bytes():
    """Device-aware VMEM limit: ~60% of physical, capped at 48 MiB."""
    try:
        cap = pltpu.get_tpu_info().vmem_capacity_bytes
        return min(48 << 20, int(0.6 * cap))
    except Exception:  # e.g. interpret mode / no device info
        return 32 << 20


# ---------------------------------------------------------------------------
# Fused InstanceNorm kernel: per-row (one row == one (b, c) pair) mean,
# unbiased std, and normalization in a single VMEM-resident pass.
# ---------------------------------------------------------------------------
def _instance_norm_kernel(x_ref, o_ref, mn_ref, sd_ref, *, eps, n):
    x = x_ref[...].astype(jnp.float32)                        # (tr, HW) f32
    mn = jnp.mean(x, axis=-1, keepdims=True)                  # (tr, 1)
    xc = x - mn
    # Unbiased variance (torch .var() default), subtract-mean form.
    # TODO(synk): n == 1 yields NaN (0/0), same as torch.var(unbiased=True).
    inv_nm1 = (1.0 / float(n - 1)) if n > 1 else float("nan")
    var_eps = jnp.sum(xc * xc, axis=-1, keepdims=True) * inv_nm1 + eps
    inv_sd = lax.rsqrt(var_eps)                               # 1 rsqrt / row (EUP)
    o_ref[...] = (xc * inv_sd).astype(o_ref.dtype)            # broadcast mul (VALU)
    mn_ref[...] = mn.astype(mn_ref.dtype)
    sd_ref[...] = jnp.sqrt(var_eps).astype(sd_ref.dtype)


def _round_down8(v):
    return max(8, (v // 8) * 8)


def instance_norm_pallas(x, eps=1e-5):
    """x: (B, C, *spatial). Returns (y, mn, sd) with torch shapes for mn/sd."""
    B, C = x.shape[:2]
    spatial = x.shape[2:]
    HW = 1
    for d in spatial:
        HW *= d
    BC = B * C

    dt = x.dtype
    xf = x.reshape(BC, HW)                         # keep native dtype on HBM

    # ---- row-tile selection --------------------------------------------
    # Keep (tile + double buffering for in and out) comfortably inside VMEM,
    # prefer large tiles (fewer grid steps), but aim for >= 2 grid steps when
    # there is enough work so a 2-TC chip (v7x) can shard the grid.
    # VMEM cost per row ~ f32 working copy, so budget against 4 bytes/elem.
    # TODO(synk): rows with HW too large to fit a single (8, HW) f32 tile in
    # VMEM would need a two-pass HW-split reduction (not implemented).
    row_bytes = HW * 4
    budget_per_buf = 8 << 20                       # 8 MiB per (in/out) buffer
    if BC <= 8:
        tr = BC                                    # full extent (always legal)
    else:
        rows_fit = max(8, budget_per_buf // max(row_bytes, 1))
        tr = min(BC, _round_down8(rows_fit))
        if BC >= 16:                               # target >= 2 grid steps
            half = -(-BC // 2)                     # ceil(BC / 2)
            tr = min(tr, -(-half // 8) * 8)        # round half up to mult of 8
    grid = (pl.cdiv(BC, tr),)

    out, mn, sd = pl.pallas_call(
        functools.partial(_instance_norm_kernel, eps=float(eps), n=HW),
        out_shape=(
            jax.ShapeDtypeStruct((BC, HW), dt),
            jax.ShapeDtypeStruct((BC, 1), dt),
            jax.ShapeDtypeStruct((BC, 1), dt),
        ),
        grid=grid,
        in_specs=[pl.BlockSpec((tr, HW), lambda i: (i, 0))],
        out_specs=(
            pl.BlockSpec((tr, HW), lambda i: (i, 0)),
            pl.BlockSpec((tr, 1), lambda i: (i, 0)),
            pl.BlockSpec((tr, 1), lambda i: (i, 0)),
        ),
        compiler_params=pltpu.CompilerParams(
            dimension_semantics=("parallel",),
            vmem_limit_bytes=_vmem_limit_bytes(),
        ),
    )(xf)

    y = out.reshape(x.shape)
    stat_shape = (B, C) + (1,) * len(spatial)      # torch: (B, C, 1, 1, ...)
    return y, mn.reshape(stat_shape), sd.reshape(stat_shape)


def instance_norm_forward(x, eps=1e-5, return_mean_std=False):
    """Matches InstanceNorm.forward(x, return_mean_std)."""
    y, mn, sd = instance_norm_pallas(x, eps=eps)
    if return_mean_std:
        return y, mn, sd
    return y


if __name__ == "__main__":
    key = jax.random.PRNGKey(0)
    x = jax.random.normal(key, (2, 4, 16, 16), jnp.float32)   # (B, C, H, W)

    y, mn, sd = instance_norm_forward(x, return_mean_std=True)
    jax.block_until_ready(y)
    jax.block_until_ready(mn)
    jax.block_until_ready(sd)

    y_only = instance_norm_forward(x)
    jax.block_until_ready(y_only)

    # Pure-JAX reference (torch semantics: unbiased variance, eps inside sqrt).
    xf = x.reshape(2, 4, -1)
    mn_ref = xf.mean(-1)
    sd_ref = jnp.sqrt(xf.var(-1, ddof=1) + 1e-5)
    y_ref = ((xf - mn_ref[..., None]) / sd_ref[..., None]).reshape(x.shape)

    assert y.shape == x.shape
    assert mn.shape == (2, 4, 1, 1) and sd.shape == (2, 4, 1, 1)
    assert jnp.allclose(y, y_ref, atol=1e-5, rtol=1e-5)
    assert jnp.allclose(y_only, y_ref, atol=1e-5, rtol=1e-5)
    assert jnp.allclose(mn[..., 0, 0], mn_ref, atol=1e-6, rtol=1e-6)
    assert jnp.allclose(sd[..., 0, 0], sd_ref, atol=1e-6, rtol=1e-6)

    print("KERNEL_OK")
</pallas_src>

<mosaic_0001>
module attributes {stable_mosaic.version = 11 : i64} {
  func.func @_instance_norm_kernel(%arg0: i32, %arg1: memref<8x256xf32, #tpu.memory_space<vmem>>, %arg2: memref<8x256xf32, #tpu.memory_space<vmem>>, %arg3: memref<8x1xf32, #tpu.memory_space<vmem>>, %arg4: memref<8x1xf32, #tpu.memory_space<vmem>>) attributes {dimension_semantics = [#tpu.dimension_semantics<parallel>], iteration_bounds = array<i64: 1>, scalar_prefetch = 0 : i64, scratch_operands = 0 : i64, tpu.core_type = #tpu.core_type<tc>, window_params = [{transform_indices = @transform_0, window_bounds = array<i64: 8, 256>}, {transform_indices = @transform_1, window_bounds = array<i64: 8, 256>}, {transform_indices = @transform_2, window_bounds = array<i64: 8, 1>}, {transform_indices = @transform_3, window_bounds = array<i64: 8, 1>}]} {
    %c0 = arith.constant 0 : index
    %c0_0 = arith.constant 0 : index
    %0 = vector.load %arg1[%c0, %c0_0] : memref<8x256xf32, #tpu.memory_space<vmem>>, vector<8x256xf32>
    %cst = arith.constant dense<0.000000e+00> : vector<8xf32>
    %1 = vector.multi_reduction <add>, %0, %cst [1] : vector<8x256xf32> to vector<8xf32>
    %2 = vector.shape_cast %1 : vector<8xf32> to vector<8x1xf32>
    %cst_1 = arith.constant 2.560000e+02 : f32
    %3 = vector.broadcast %cst_1 : f32 to vector<8x1xf32>
    %4 = arith.divf %2, %3 : vector<8x1xf32>
    %5 = vector.broadcast %4 : vector<8x1xf32> to vector<8x256xf32>
    %6 = arith.subf %0, %5 : vector<8x256xf32>
    %7 = arith.mulf %6, %6 : vector<8x256xf32>
    %cst_2 = arith.constant dense<0.000000e+00> : vector<8xf32>
    %8 = vector.multi_reduction <add>, %7, %cst_2 [1] : vector<8x256xf32> to vector<8xf32>
    %9 = vector.shape_cast %8 : vector<8xf32> to vector<8x1xf32>
    %cst_3 = arith.constant 0.00392156886 : f32
    %10 = vector.broadcast %cst_3 : f32 to vector<8x1xf32>
    %11 = arith.mulf %9, %10 : vector<8x1xf32>
    %cst_4 = arith.constant 9.99999974E-6 : f32
    %12 = vector.broadcast %cst_4 : f32 to vector<8x1xf32>
    %13 = arith.addf %11, %12 : vector<8x1xf32>
    %14 = math.rsqrt %13 : vector<8x1xf32>
    %15 = vector.broadcast %14 : vector<8x1xf32> to vector<8x256xf32>
    %16 = arith.mulf %6, %15 : vector<8x256xf32>
    %c0_5 = arith.constant 0 : index
    %c0_6 = arith.constant 0 : index
    %17 = vector.load %arg2[%c0_5, %c0_6] : memref<8x256xf32, #tpu.memory_space<vmem>>, vector<8x256xf32>
    tpu.vector_store %arg2[%c0_5, %c0_6], %16 {strides = array<i32>} : memref<8x256xf32, #tpu.memory_space<vmem>>, vector<8x256xf32>,
    %c0_7 = arith.constant 0 : index
    %c0_8 = arith.constant 0 : index
    %18 = vector.load %arg3[%c0_7, %c0_8] : memref<8x1xf32, #tpu.memory_space<vmem>>, vector<8x1xf32>
    tpu.vector_store %arg3[%c0_7, %c0_8], %4 {strides = array<i32>} : memref<8x1xf32, #tpu.memory_space<vmem>>, vector<8x1xf32>,
    %19 = math.sqrt %13 : vector<8x1xf32>
    %c0_9 = arith.constant 0 : index
    %c0_10 = arith.constant 0 : index
    %20 = vector.load %arg4[%c0_9, %c0_10] : memref<8x1xf32, #tpu.memory_space<vmem>>, vector<8x1xf32>
    tpu.vector_store %arg4[%c0_9, %c0_10], %19 {strides = array<i32>} : memref<8x1xf32, #tpu.memory_space<vmem>>, vector<8x1xf32>,
    return
  }
  func.func @transform_0(%arg0: i32) -> (i32, i32) {
    %c0_i32 = arith.constant 0 : i32
    %c0_i32_0 = arith.constant 0 : i32
    return %arg0, %c0_i32 : i32, i32
  }
  func.func @transform_1(%arg0: i32) -> (i32, i32) {
    %c0_i32 = arith.constant 0 : i32
    %c0_i32_0 = arith.constant 0 : i32
    return %arg0, %c0_i32 : i32, i32
  }
  func.func @transform_2(%arg0: i32) -> (i32, i32) {
    %c0_i32 = arith.constant 0 : i32
    %c0_i32_0 = arith.constant 0 : i32
    return %arg0, %c0_i32 : i32, i32
  }
  func.func @transform_3(%arg0: i32) -> (i32, i32) {
    %c0_i32 = arith.constant 0 : i32
    %c0_i32_0 = arith.constant 0 : i32
    return %arg0, %c0_i32 : i32, i32
  }
}

</mosaic_0001>

<bundles_post_ra>
// kernel: tpu_custom_call.1
= control target key start
LH: loop header
LB: loop body
LE: loop exit
PB: predicated region body
PF: predicated region fallthrough
CT: control target
= control target key end

     0   :  { %9 = vsyncpa [#allocation3], 0  ;;  %s184_s0 = inlined_call_operand.hbm [shape: f32[8,256], index: 0, kind: input, shape index: {}]   ;;  %s185_s1 = inlined_call_operand.hbm [shape: f32[8,256], index: 1, kind: output, shape index: {0}]   ;;  %s186_s2 = inlined_call_operand.vmem [shape: f32[8,1], index: 2, kind: output, shape index: {1}]   ;;  %s187_s3 = inlined_call_operand.vmem [shape: f32[8,1], index: 3, kind: output, shape index: {2}]  }
   0x1   :  { %10 = vsyncpa [#allocation4], 0  ;;  %s130_s12 = smov [#allocation2]   ;;  %s82_s16 = scalar_lea.hbm %s184_s0, 256 }
   0x2   :  { %s17_s13 = sshll.u32 %s130_s12, 4  ;;  %p83_p0 = scmp.ne.s32.totalorder %s184_s0, %s82_s16  ;;  %s18_s13 = int_to_ptr.vmem [resolvable:$true] %s17_s13 }
   0x3   :  { %p86_p1 = scmp.lt.u32.totalorder %s82_s16, %s184_s0 }
   0x5   :  { %p88_p2 = pnand %p86_p1, %p83_p0 }
   0x7   :  { %91 = shalt.err (!%p88_p2)
}
   0x8   :  { %s92_s21 = scalar_lea.vmem %s18_s13, 256  ;;  %p97_p4 = scmp.lt.s32.totalorder %s18_s13, %s18_s13 }
   0x9   :  { %p93_p3 = scmp.ne.s32.totalorder %s18_s13, %s92_s21  ;;  %p98_p5 = scmp.lt.s32.totalorder %s92_s21, %s92_s21 }
   0xb   :  { %p99_p6 = por %p98_p5, %p97_p4 }
   0xd   :  { %p100_p7 = pnand %p99_p6, %p93_p3 }
   0xf   :  { %103 = shalt.err (!%p100_p7)
}
  0x10   :  { %20 = dma.hbm_to_vmem [thread:$0]  %s184_s0, 256, %s18_s13, [#allocation3]  }
  0x11   :  { %126 = dma.done.wait [#allocation3], 256  }
  0x12   :  { %127 = vsyncadd [#allocation3], 4294967040  ;;  %v24_v0 = vld [vmem:[#allocation2] sm:$0xff]  ;;  %v25_v1 = vld [vmem:[#allocation2 + $0x8] sm:$0xff]  ;;  %vm45_vm0 = vcmask 7168   ;;  %s131_s0 = smov [#allocation5]  }
  0x13   :  { %v26_v2 = vadd.f32 %v25_v1, %v24_v0  ;;  %s61_s26 = sshll.u32 %s131_s0, 4  ;;  %s62_s26 = int_to_ptr.vmem [resolvable:$true] %s61_s26 }
  0x14   :  { %p109_p9 = scmp.lt.s32.totalorder %s62_s26, %s62_s26 }
  0x15   :  { %27 = vadd.xlane.f32.xlu0 %v26_v2 }
  0xa2   :  { %v28_v3 = vpop.xlane.xlu0 %27 }
  0xa3   :  { %v30_v4 = vmul.f32 0.00390625, %v28_v3 }
  0xa5   :  { %v31_v5 = vsub.f32 %v24_v0, %v30_v4  ;;  %v32_v6 = vsub.f32 %v25_v1, %v30_v4  ;;  %46 = vst.msk [vmem:[%s186_s2] sm:$0xff] %vm45_vm0, %v30_v4  ;;  %s104_s2 = scalar_lea.vmem %s62_s26, 256 }
  0xa6   :  { %p105_p8 = scmp.ne.s32.totalorder %s62_s26, %s104_s2  ;;  %p110_p10 = scmp.lt.s32.totalorder %s104_s2, %s104_s2 }
  0xa7   :  { %v33_v7 = vmul.f32 %v31_v5, %v31_v5  ;;  %v34_v8 = vmul.f32 %v32_v6, %v32_v6 }
  0xa8   :  { %p111_p11 = por %p110_p10, %p109_p9 }
  0xa9   :  { %v35_v9 = vadd.f32 %v34_v8, %v33_v7 }
  0xaa   :  { %p112_p12 = pnand %p111_p11, %p105_p8 }
  0xab   :  { %36 = vadd.xlane.f32.xlu0 %v35_v9 }
 0x138   :  { %v37_v10 = vpop.xlane.xlu0 %36 }
 0x139   :  { %v38_v11 = vmul.f32 0.003921569, %v37_v10 }
 0x13b   :  { %v39_v12 = vadd.f32 1e-05, %v38_v11 }
 0x13d   :  { %80 = vrsqrt.f32 %v39_v12  ;;  %vm49_vm1 = vcmp.eq.f32.partialorder %v39_v12, inf  ;;  %v52_v17 = vand.u32 2147483648, %v39_v12  ;;  %vm51_vm2 = vcmp.eq.f32.partialorder %v39_v12, 0.0 }
 0x147   :  { %v81_v13 = vpop.eup %80 }
 0x148   :  { %v48_v14 = vmul.f32 %v81_v13, %v39_v12  ;;  %v41_v15 = vmul.f32 %v81_v13, %v31_v5  ;;  %v42_v16 = vmul.f32 %v81_v13, %v32_v6 }
 0x14a   :  { %v50_v18 = vsel %vm49_vm1, %v39_v12, %v48_v14  ;;  %43 = vst [vmem:[#allocation5] sm:$0xff] %v41_v15  ;;  %44 = vst [vmem:[#allocation5 + $0x8] sm:$0xff] %v42_v16 }
 0x14b   :  { %v53_v19 = vsel %vm51_vm2, %v52_v17, %v50_v18 }
 0x14c   :  { %115 = shalt.err (!%p112_p12)
}
 0x14d   :  { %s116_s29 = scalar_lea.hbm %s185_s1, 256 }
 0x14e   :  { %p117_p13 = scmp.ne.s32.totalorder %s185_s1, %s116_s29  ;;  %p120_p0 = scmp.lt.u32.totalorder %s116_s29, %s185_s1 }
 0x150   :  { %p122_p1 = pnand %p120_p0, %p117_p13 }
 0x152   :  { %125 = shalt.err (!%p122_p1)
}
 0x153   :  { %64 = dma.vmem_to_hbm [thread:$0]  %s62_s26, 256, %s185_s1, [#allocation4]   ;;  %54 = vst.msk [vmem:[%s187_s3] sm:$0xff] %vm45_vm0, %v53_v19 }
 0x154   :  { %128 = dma.done.wait [#allocation4], 256  }
 0x155   :  { %129 = vsyncadd [#allocation4], 4294967040 }
 0x156   :  { %76 = vsyncpa [#allocation3], 1 }
 0x157   :  { %77 = vsyncpa [#allocation4], 1 }

</bundles_post_ra>
